<compile_context>
chip_gen: v7x
topology: tpu7x:2x2x1
jax: 0.10.0
libtpu: 0.0.40
codegen_flags: <defaults>
</compile_context>

<pallas_src>
import functools
import math

import jax
import jax.numpy as jnp
from jax.experimental import pallas as pl
from jax.experimental.pallas import tpu as pltpu


# ---------------------------------------------------------------------------
# Kernels
# ---------------------------------------------------------------------------

def _posemb_half_kernel(t_ref, freqs_ref, out_ref, *, half_dim):
    """half_dim % 128 == 0: two lane-aligned, unmasked dense stores."""
    # t_ref: (TB, 1) f32 ; freqs_ref: (1, half_dim) f32 ; out_ref: (TB, dim) f32
    arg = t_ref[...] * freqs_ref[...]              # (TB, half_dim) via broadcast
    out_ref[:, :half_dim] = jnp.sin(arg)
    out_ref[:, half_dim:] = jnp.cos(arg)


def _posemb_full_kernel(t_ref, freqs2_ref, out_ref, *, half_dim):
    """Lane-misaligned half_dim: single dense full-width store."""
    # t_ref: (TB, 1) f32 ; freqs2_ref: (1, dim) f32 (= [freqs, freqs]) ;
    # out_ref: (TB, dim) f32
    arg = t_ref[...] * freqs2_ref[...]             # (TB, dim)
    col = jax.lax.broadcasted_iota(jnp.int32, arg.shape, dimension=1)  # 2-D iota
    out_ref[...] = jnp.where(col < half_dim, jnp.sin(arg), jnp.cos(arg))


# ---------------------------------------------------------------------------
# Tiling helpers
# ---------------------------------------------------------------------------

def _choose_batch_tile(B, dim, block_b=None):
    """Batch tile: multiple of 8 dividing B, VMEM-friendly, >=2 grid steps."""
    if block_b is not None:
        assert B % block_b == 0, "block_b must divide B"
        return block_b
    if B <= 8 or B % 8 != 0:
        # Small / awkward batch: single full block (block dims == array dims).
        return B
    # Cap one f32 output tile at ~4 MiB (x2 double-buffering => ~8 MiB),
    # comfortably under the explicit 32 MiB vmem_limit_bytes below.
    max_rows = max(8, (4 * 1024 * 1024) // (dim * 4))
    tb = min(B, (max_rows // 8) * 8)
    # Force >= 2 grid steps so the "parallel" batch axis can be split across
    # v7x's two TensorCores.
    if B >= 16:
        tb = min(tb, (B // 2 // 8) * 8)
    tb = max(tb, 8)
    while tb > 8 and B % tb != 0:
        tb -= 8
    return tb if (tb >= 8 and B % tb == 0) else B


# ---------------------------------------------------------------------------
# Reference (also the tiny-shape fast path)
# ---------------------------------------------------------------------------

def _reference(time, dim, theta=10000):
    half_dim = dim // 2
    emb = math.log(theta) / (half_dim - 1)
    freqs = jnp.exp(jnp.arange(half_dim, dtype=jnp.float32) * -emb)
    arg = jnp.asarray(time, jnp.float32)[:, None] * freqs[None, :]
    return jnp.concatenate([jnp.sin(arg), jnp.cos(arg)], axis=-1)


# ---------------------------------------------------------------------------
# Public wrapper
# ---------------------------------------------------------------------------

def sinusoidal_pos_emb(time, dim, theta=10000, block_b=None, use_pallas=None):
    """time: (B,) -> (B, dim) float32. Matches torch SinusoidalPosEmb.forward."""
    assert dim % 2 == 0, "dim must be even (PyTorch module assumes even dim)"
    half_dim = dim // 2
    assert half_dim > 1, "dim must be >= 4 (half_dim - 1 appears in a division)"

    time = jnp.asarray(time, jnp.float32)
    B = time.shape[0]

    # Tiny-shape fast path: the kernel would be pure launch overhead and a
    # <128-lane output can never be stored unmasked.  Fused XLA is cheaper.
    if use_pallas is None:
        use_pallas = (dim >= 128) and (B * dim * 4 >= (1 << 20))
    if not use_pallas:
        return _reference(time, dim, theta)

    t2d = time.reshape(B, 1)

    # Hoisted static frequency table (no per-row exp/iota inside the kernel).
    emb = math.log(theta) / (half_dim - 1)
    freqs = jnp.exp(jnp.arange(half_dim, dtype=jnp.float32) * -emb)

    tb = _choose_batch_tile(B, dim, block_b)
    grid = (B // tb,)

    lane_aligned_halves = (half_dim % 128 == 0)
    if lane_aligned_halves:
        # Half-width two-store form: both stores lane-aligned & unmasked,
        # sin/cos computed once on (TB, half_dim).
        kernel = functools.partial(_posemb_half_kernel, half_dim=half_dim)
        freq_in = freqs.reshape(1, half_dim)
        freq_spec = pl.BlockSpec((1, half_dim), lambda i: (0, 0))
    else:
        # Full-width single dense store: freqs tiled to [freqs, freqs].
        kernel = functools.partial(_posemb_full_kernel, half_dim=half_dim)
        freq_in = jnp.concatenate([freqs, freqs]).reshape(1, dim)
        freq_spec = pl.BlockSpec((1, dim), lambda i: (0, 0))

    return pl.pallas_call(
        kernel,
        out_shape=jax.ShapeDtypeStruct((B, dim), jnp.float32),
        grid=grid,
        in_specs=[
            pl.BlockSpec((tb, 1), lambda i: (i, 0)),   # time tile
            freq_spec,                                  # shared freq table
        ],
        out_specs=pl.BlockSpec((tb, dim), lambda i: (i, 0)),
        compiler_params=pltpu.CompilerParams(
            dimension_semantics=("parallel",),
            vmem_limit_bytes=32 * 1024 * 1024,
        ),
    )(t2d, freq_in)


# ---------------------------------------------------------------------------
# Self-test
# ---------------------------------------------------------------------------

if __name__ == "__main__":
    key = jax.random.PRNGKey(0)
    k1, k2, k3 = jax.random.split(key, 3)

    # 1) Tiny shape typical of diffusion timestep embedding -> XLA fast path.
    B, dim = 2, 32
    t = jax.random.uniform(k1, (B,), jnp.float32, 0.0, 100.0)
    out = sinusoidal_pos_emb(t, dim)
    jax.block_until_ready(out)
    assert out.shape == (B, dim)
    assert jnp.allclose(out, _reference(t, dim), atol=1e-5, rtol=1e-5)

    # 2) Pallas path, lane-misaligned halves (dim=128 -> half_dim=64):
    #    full-width dense-store kernel, grid forced to >= 2 steps.
    B2, dim2 = 64, 128
    t2 = jax.random.uniform(k2, (B2,), jnp.float32, 0.0, 1000.0)
    out2 = sinusoidal_pos_emb(t2, dim2, use_pallas=True)
    jax.block_until_ready(out2)
    assert out2.shape == (B2, dim2)
    assert jnp.allclose(out2, _reference(t2, dim2), atol=1e-4, rtol=1e-5)

    # 3) Pallas path, lane-aligned halves (dim=256 -> half_dim=128):
    #    half-width two-store kernel, multi-block grid.
    B3, dim3 = 64, 256
    t3 = jax.random.uniform(k3, (B3,), jnp.float32, 0.0, 1000.0)
    out3 = sinusoidal_pos_emb(t3, dim3, use_pallas=True, block_b=16)
    jax.block_until_ready(out3)
    assert out3.shape == (B3, dim3)
    assert jnp.allclose(out3, _reference(t3, dim3), atol=1e-4, rtol=1e-5)

    print("KERNEL_OK")
</pallas_src>

<mosaic_0001>
module attributes {stable_mosaic.version = 11 : i64} {
  func.func @_posemb_full_kernel(%arg0: i32, %arg1: memref<32x1xf32, #tpu.memory_space<vmem>>, %arg2: memref<1x128xf32, #tpu.memory_space<vmem>>, %arg3: memref<32x128xf32, #tpu.memory_space<vmem>>) attributes {dimension_semantics = [#tpu.dimension_semantics<parallel>], iteration_bounds = array<i64: 2>, scalar_prefetch = 0 : i64, scratch_operands = 0 : i64, tpu.core_type = #tpu.core_type<tc>, window_params = [{transform_indices = @transform_0, window_bounds = array<i64: 32, 1>}, {pipeline_mode = #tpu.pipeline_mode<synchronous>, transform_indices = @transform_1, window_bounds = array<i64: 1, 128>}, {transform_indices = @transform_2, window_bounds = array<i64: 32, 128>}]} {
    %c0 = arith.constant 0 : index
    %c0_0 = arith.constant 0 : index
    %0 = vector.load %arg1[%c0, %c0_0] : memref<32x1xf32, #tpu.memory_space<vmem>>, vector<32x1xf32>
    %c0_1 = arith.constant 0 : index
    %c0_2 = arith.constant 0 : index
    %1 = vector.load %arg2[%c0_1, %c0_2] : memref<1x128xf32, #tpu.memory_space<vmem>>, vector<1x128xf32>
    %2 = vector.broadcast %0 : vector<32x1xf32> to vector<32x128xf32>
    %3 = vector.broadcast %1 : vector<1x128xf32> to vector<32x128xf32>
    %4 = arith.mulf %2, %3 : vector<32x128xf32>
    %5 = tpu.iota {dimensions = array<i32: 1>} : vector<32x128xi32>
    %c64_i32 = arith.constant 64 : i32
    %6 = vector.broadcast %c64_i32 : i32 to vector<32x128xi32>
    %7 = arith.cmpi slt, %5, %6 : vector<32x128xi32>
    %8 = math.sin %4 : vector<32x128xf32>
    %9 = math.cos %4 : vector<32x128xf32>
    %10 = arith.select %7, %8, %9 : vector<32x128xi1>, vector<32x128xf32>
    %c0_3 = arith.constant 0 : index
    %c0_4 = arith.constant 0 : index
    %11 = vector.load %arg3[%c0_3, %c0_4] : memref<32x128xf32, #tpu.memory_space<vmem>>, vector<32x128xf32>
    tpu.vector_store %arg3[%c0_3, %c0_4], %10 {strides = array<i32>} : memref<32x128xf32, #tpu.memory_space<vmem>>, vector<32x128xf32>,
    return
  }
  func.func @transform_0(%arg0: i32) -> (i32, i32) {
    %c0_i32 = arith.constant 0 : i32
    %c0_i32_0 = arith.constant 0 : i32
    return %arg0, %c0_i32 : i32, i32
  }
  func.func @transform_1(%arg0: i32) -> (i32, i32) {
    %c0_i32 = arith.constant 0 : i32
    %c0_i32_0 = arith.constant 0 : i32
    %c0_i32_1 = arith.constant 0 : i32
    return %c0_i32, %c0_i32_0 : i32, i32
  }
  func.func @transform_2(%arg0: i32) -> (i32, i32) {
    %c0_i32 = arith.constant 0 : i32
    %c0_i32_0 = arith.constant 0 : i32
    return %arg0, %c0_i32 : i32, i32
  }
}

</mosaic_0001>

<bundles_post_ra>
// kernel: tpu_custom_call.1
= control target key start
LH: loop header
LB: loop body
LE: loop exit
PB: predicated region body
PF: predicated region fallthrough
CT: control target
= control target key end

     0   :  { %7 = vsyncpa [#allocation3], 0  ;;  %s1759_s0 = inlined_call_operand.vmem [shape: f32[64,1], index: 0, kind: input, shape index: {}]   ;;  %s1760_s1 = inlined_call_operand.vmem [shape: f32[1,128], index: 1, kind: input, shape index: {}]   ;;  %s1761_s2 = inlined_call_operand.hbm [shape: f32[64,128], index: 2, kind: output, shape index: {}]  }
   0x1   :  { %9 = vsyncpa [#allocation3 + $0x1], 0  ;;  %s1312_s9 = smov 0   ;;  %s1314_s10 = smov 0  }
   0x2   :  { %s1316_s11 = smov 0   ;;  %s1318_s12 = smov 0  }
   0x3 LB: > { %s1333_s13 = sadd.s32 4294967295, %s1285_s12   ;;  %s1095_s14 = sadd.s32 4294967294, %s1285_s12   ;;  %s1285_s12 = sphi %s1318_s12, %s1771_s12   ;;  %s1281_s11 = sphi %s1316_s11, %s1770_s11   ;;  %s1277_s10 = sphi %s1314_s10, %s1769_s10   ;;  %s1273_s9 = sphi %s1312_s9, %s1768_s9  }
   0x4   : > { %s1337_s15 = sadd.s32 1, %s1285_s12   ;;  %s69_s16 = sadd.s32 1, %s1281_s11 }
   0x5   : > { %s66_s17 = ssub.s32 %s1285_s12, %s1337_s15  ;;  %p79_p0 = scmp.ne.s32.totalorder %s1281_s11, %s1277_s10 }
   0x6   : > { %p67_p1 = scmp.eq.s32.totalorder %s66_s17, 0  ;;  %p80_p2 = scmp.eq.s32.totalorder %s1333_s13, 1 }
   0x7   : > { %p85_p3 = scmp.ne.s32.totalorder %s1277_s10, %s1273_s9  ;;  %p86_p4 = scmp.eq.s32.totalorder %s1095_s14, 1 }
   0x8   : > { %s1348_s18 = scalar_select %p67_p1, %s1281_s11, %s69_s16  }
   0x9   : > { %p1350_p5 = por %p80_p2, %p79_p0  ;;  %p1354_p6 = por %p86_p4, %p85_p3 }
   0xa   : > { %p1098_p7 = scmp.ge.s32.totalorder %s1285_s12, 1  ;;  %p116_p8 = scmp.lt.s32.totalorder %s1285_s12, 3 }
   0xc   : > { %p117_p9 = pnand %p1098_p7, %p116_p8 }
   0xd   : > { %s1100_s21 = sshll.u32 (!%p117_p9), %s1333_s13, 2  ;;  %v1287_v0 = vmov (!%p117_p9), 0   ;;  %v1102_v5 = vld [vmem:[%s1760_s1] ss:$0 sm:$0xff] (!%p117_p9)  ;;  %v1288_v40 = vmov (!%p117_p9), 683565275  }
   0xe   : > { %120 = sbr.rel (%p117_p9) target bundleno = 314 (0x13a), region = 28  ;;  %1206 = vset.pattern.permute.xlu1 (!%p117_p9), %v1287_v0  ;;  %1205 = vset.pattern.permute.xlu0 (!%p117_p9), %v1287_v0  ;;  %p139_p10 = scmp.lt.s32.totalorder (!%p117_p9), %s1100_s21, 7  ;;  %v1289_v44 = vmov (!%p117_p9), 2475754826   ;;  %v1290_v46 = vmov (!%p117_p9), 2131351028  }
   0xf   : > { %v1291_v48 = vmov (!%p117_p9), 2102212464   ;;  %v1292_v50 = vmov (!%p117_p9), 920167782   ;;  %v1293_v57 = vmov (!%p117_p9), 1326507024  }
  0x10   : > { %s135_s28 = sand.u32 (!%p117_p9), 1, %s1277_s10   ;;  %s1140_s3 = sshll.u32 (!%p117_p9), %s1333_s13, 9 }
  0x11   : > { %s1099_s29 = sshll.u32 (!%p117_p9), %s135_s28, 5  ;;  %s1709_s7 = scalar_lea.hbm (!%p117_p9), %s1761_s2, %s1140_s3 }
  0x12   : > { %s1654_s30 = scalar_lea.vmem (!%p117_p9), [#allocation2], %s1099_s29  ;;  %s1718_s8 = scalar_lea.sflag (!%p117_p9), [#allocation3], %s135_s28 }
  0x13   : > { %s1033_s4 = sshll.u32 (!%p117_p9), %s1654_s30, 4  ;;  %s1294_s14 = smov (!%p117_p9), [#allocation2]   ;;  %s1711_s4 = int_to_ptr.vmem [resolvable:$true] %s1033_s4 }
  0x14   : > { %s1223_s13 = scalar_lea.vmem (!%p117_p9), %s1711_s4, 512  ;;  %s1227_s16 = sshll.u32 (!%p117_p9), %s1294_s14, 4  ;;  %s1228_s16 = int_to_ptr.vmem [resolvable:$false] %s1227_s16 }
  0x15   : > { %s1773_s21 = smov (!%p139_p10, %s1100_s21), 7  ;;  %p1224_p11 = scmp.ne.s32.totalorder %s1711_s4, %s1223_s13 }
  0x16   : > { %s1101_s22 = sshll.u32 %s1773_s21, 3  ;;  %s1229_s17 = scalar_lea.vmem %s1228_s16, 1024 }
  0x17   : > { %s142_s25 = scalar_lea.vmem %s1759_s0, %s1101_s22  ;;  %p1225_p12 = pnand %p1224_p11, %p1350_p5 }
  0x18   : > { %v147_v1 = vld [vmem:[%s142_s25 + $0x10] sm:$0xff]  ;;  %v145_v2 = vld [vmem:[%s142_s25] sm:$0xff]  ;;  %v148_v3 = vld [vmem:[%s142_s25 + $0x18] sm:$0xff]  ;;  %p1230_p0 = scmp.lt.s32.totalorder %s1711_s4, %s1228_s16  ;;  %p1231_p1 = scmp.lt.s32.totalorder %s1229_s17, %s1223_s13 }
  0x19   : > { %162 = vperm.xlu1 %1206, %v147_v1   ;;  %152 = vperm.xlu0 %1205, %v145_v2   ;;  %v146_v4 = vld [vmem:[%s142_s25 + $0x8] sm:$0xff]  ;;  %p1226_p13 = pneg %p1225_p12 }
  0x1a   : > { %p1232_p2 = por %p1231_p1, %p1230_p0 }
  0x1c   : > { %p1233_p3 = pnand %p1232_p2, %p1226_p13 }
  0x1d   : > { %167 = vperm.xlu1 %1206, %v148_v3   ;;  %157 = vperm.xlu0 %1205, %v146_v4  }
  0x98   : > { %v163_v6 = vpop.permute.xlu1 %162  ;;  %v153_v7 = vpop.permute.xlu0 %152 }
  0x99   : > { %v1367_v8 = vmul.f32 %v1102_v5, %v163_v6  ;;  %v1369_v9 = vmul.f32 %v1102_v5, %v153_v7 }
  0x9b   : > { %v391_v10 = vand.u32 2147483647, %v1367_v8  ;;  %v394_v11 = vand.u32 2139095040, %v1367_v8  ;;  %v183_v12 = vand.u32 2147483647, %v1369_v9  ;;  %v186_v13 = vand.u32 2139095040, %v1369_v9 }
  0x9c   : > { %v168_v14 = vpop.permute.xlu1 %167  ;;  %v158_v28 = vpop.permute.xlu0 %157  ;;  %vm393_vm13 = vcmp.lt.s32.totalorder %v1367_v8, 0 }
  0x9d   : > { %v395_v15 = vshrl.u32 %v394_v11, 23  ;;  %v1375_v16 = vmul.f32 %v1102_v5, %v168_v14  ;;  %v398_v17 = vand.u32 8388607, %v391_v10  ;;  %v187_v18 = vshrl.u32 %v186_v13, 23 }
  0x9e   : > { %v190_v19 = vand.u32 8388607, %v183_v12  ;;  %v1382_v34 = vmul.f32 %v1102_v5, %v158_v28  ;;  %vm1470_vm14 = vcmp.le.f32.partialorder %v391_v10, 0.7853982 }
  0x9f   : > { %v1111_v20 = vadd.s32 4294967169, %v395_v15  ;;  %v1103_v21 = vadd.s32 4294967169, %v187_v18  ;;  %v498_v22 = vand.u32 2139095040, %v1375_v16  ;;  %v399_v24 = vor.u32 8388608, %v398_v17 }
  0xa0   : > { %v191_v25 = vor.u32 8388608, %v190_v19  ;;  %v495_v38 = vand.u32 2147483647, %v1375_v16 }
  0xa1   : > { %v401_v23 = vadd.s32 1, %v1111_v20  ;;  %v193_v26 = vadd.s32 1, %v1103_v21  ;;  %v499_v27 = vshrl.u32 %v498_v22, 23  ;;  %v1384_v35 = vshll.u32 %v399_v24, 8 }
  0xa2   : > { %v1388_v37 = vshll.u32 %v191_v25, 8 }
  0xa3   : > { %vm402_vm0 = vcmp.gt.s32.totalorder %v401_v23, 0  ;;  %vm194_vm1 = vcmp.gt.s32.totalorder %v193_v26, 0  ;;  %v1115_v30 = vadd.s32 4294967169, %v499_v27 }
  0xa4   : > { %v403_v29 = vsel %vm402_vm0, %v401_v23, 0  ;;  %v195_v33 = vsel %vm194_vm1, %v193_v26, 0  ;;  %vm185_vm0 = vcmp.lt.s32.totalorder %v1369_v9, 0 }
  0xa5   : > { %v404_v31 = vshrl.u32 %v403_v29, 5  ;;  %v405_v32 = vand.u32 31, %v403_v29  ;;  %v1386_v36 = vshrl.u32 %v195_v33, 5  ;;  %v197_v42 = vand.u32 31, %v195_v33 }
  0xa6   : > { %v1392_v43 = vadd.s32 1, %v1115_v30 }
  0xa7   : > { %v406_v39 = vsub.s32 32, %v405_v32  ;;  %v408_v41 = vshll.u32 %v1288_v40, %v405_v32  ;;  %v411_v45 = vshll.u32 %v1289_v44, %v405_v32  ;;  %v414_v47 = vshll.u32 %v1290_v46, %v405_v32 }
  0xa8   : > { %v417_v49 = vshll.u32 %v1291_v48, %v405_v32  ;;  %v420_v51 = vshll.u32 %v1292_v50, %v405_v32  ;;  %vm423_vm2 = vcmp.lt.s32.totalorder %v404_v31, 1  ;;  %vm424_vm3 = vcmp.lt.s32.totalorder %v404_v31, 2 }
  0xa9   : > { %v409_v52 = vshrl.u32 %v1289_v44, %v406_v39  ;;  %v412_v53 = vshrl.u32 %v1290_v46, %v406_v39  ;;  %v415_v54 = vshrl.u32 %v1291_v48, %v406_v39  ;;  %v407_v55 = vshrl.u32 %v1288_v40, %v406_v39 }
  0xaa   : > { %v418_v56 = vshrl.u32 %v1292_v50, %v406_v39  ;;  %v421_v58 = vshrl.u32 %v1293_v57, %v406_v39  ;;  %v198_v62 = vsub.s32 32, %v197_v42  ;;  %vm425_vm4 = vcmp.lt.s32.totalorder %v404_v31, 3 }
  0xab   : > { %v410_v59 = vor.u32 %v409_v52, %v408_v41  ;;  %v413_v60 = vor.u32 %v412_v53, %v411_v45  ;;  %v416_v61 = vor.u32 %v415_v54, %v414_v47  ;;  %vm426_vm5 = vcmp.lt.s32.totalorder %v404_v31, 4 }
  0xac   : > { %v419_v63 = vor.u32 %v418_v56, %v417_v49  ;;  %v422_v0 = vor.u32 %v421_v58, %v420_v51  ;;  %v200_v11 = vshll.u32 %v1288_v40, %v197_v42  ;;  %v201_v15 = vshrl.u32 %v1289_v44, %v198_v62 }
  0xad   : > { %v427_v1 = vsel %vm423_vm2, %v407_v55, %v410_v59  ;;  %v428_v2 = vsel %vm426_vm5, %v416_v61, 2102212464  ;;  %v431_v3 = vsel %vm423_vm2, %v410_v59, %v413_v60  ;;  %v435_v4 = vsel %vm423_vm2, %v413_v60, %v416_v61 }
  0xae   : > { %v429_v5 = vsel %vm425_vm4, %v413_v60, %v428_v2  ;;  %v432_v6 = vsel %vm426_vm5, %v419_v63, 920167782  ;;  %v436_v7 = vsel %vm426_vm5, %v422_v0, 1326507024  ;;  %v203_v17 = vshll.u32 %v1289_v44, %v197_v42 }
  0xaf   : > { %v433_v13 = vsel %vm425_vm4, %v416_v61, %v432_v6  ;;  %v437_v14 = vsel %vm425_vm4, %v419_v63, %v436_v7  ;;  %v430_v18 = vsel %vm424_vm3, %v427_v1, %v429_v5  ;;  %v204_v21 = vshrl.u32 %v1290_v46, %v198_v62 }
  0xb0   : > { %v434_v19 = vsel %vm424_vm3, %v431_v3, %v433_v13  ;;  %v438_v20 = vsel %vm424_vm3, %v435_v4, %v437_v14  ;;  %v202_v26 = vor.u32 %v201_v15, %v200_v11  ;;  %v206_v28 = vshll.u32 %v1290_v46, %v197_v42 }
  0xb1   : > { %v1415_v22 = vmul.u32.u64.low %v1384_v35, %v438_v20  ;;  %v1416_v23 = vmul.u32.u64.high %v1384_v35, %v438_v20, %v1415_v22  ;;  %v1419_v24 = vmul.u32.u64.low %v1384_v35, %v434_v19  ;;  %v1420_v25 = vmul.u32.u64.high %v1384_v35, %v434_v19, %v1419_v24 }
  0xb2   : > { %v205_v27 = vor.u32 %v204_v21, %v203_v17  ;;  %v207_v29 = vshrl.u32 %v1291_v48, %v198_v62  ;;  %v199_v30 = vshrl.u32 %v1288_v40, %v198_v62  ;;  %v209_v31 = vshll.u32 %v1291_v48, %v197_v42 }
  0xb3   : > { %v210_v32 = vshrl.u32 %v1292_v50, %v198_v62  ;;  %v213_v33 = vshrl.u32 %v1293_v57, %v198_v62  ;;  %v446_v39 = vmul.u32 %v1384_v35, %v430_v18  ;;  %v212_v45 = vshll.u32 %v1292_v50, %v197_v42 }
  0xb4   : > { %v208_v41 = vor.u32 %v207_v29, %v206_v28  ;;  %vm215_vm6 = vcmp.lt.s32.totalorder %v1386_v36, 1  ;;  %vm448_vm7 = vc.u32 %v1416_v23, %v1419_v24  ;;  %v449_v47 = vadd.s32 1, %v1420_v25 }
  0xb5   : > { %v211_v49 = vor.u32 %v210_v32, %v209_v31  ;;  %vm216_vm8 = vcmp.lt.s32.totalorder %v1386_v36, 2  ;;  %v214_v51 = vor.u32 %v213_v33, %v212_v45  ;;  %vm217_vm9 = vcmp.lt.s32.totalorder %v1386_v36, 3 }
  0xb6   : > { %vm218_vm10 = vcmp.lt.s32.totalorder %v1386_v36, 4  ;;  %v223_v52 = vsel %vm215_vm6, %v202_v26, %v205_v27  ;;  %v450_v35 = vsel %vm448_vm7, %v449_v47, %v1420_v25  ;;  %v227_v54 = vsel %vm215_vm6, %v205_v27, %v208_v41 }
  0xb7   : > { %v220_v53 = vsel %vm218_vm10, %v208_v41, 2102212464  ;;  %v224_v42 = vsel %vm218_vm10, %v211_v49, 920167782  ;;  %v451_v55 = vadd.s32 %v450_v35, %v446_v39  ;;  %v219_v56 = vsel %vm215_vm6, %v199_v30, %v202_v26 }
  0xb8   : > { %v225_v58 = vsel %vm217_vm9, %v208_v41, %v224_v42  ;;  %v228_v59 = vsel %vm218_vm10, %v214_v51, 1326507024  ;;  %v221_v60 = vsel %vm217_vm9, %v205_v27, %v220_v53  ;;  %vm506_vm11 = vcmp.gt.s32.totalorder %v1392_v43, 0 }
  0xb9   : > { %v226_v61 = vsel %vm216_vm8, %v223_v52, %v225_v58  ;;  %v229_v62 = vsel %vm217_vm9, %v211_v49, %v228_v59  ;;  %v452_v63 = vadd.s32 536870912, %v451_v55  ;;  %v222_v6 = vsel %vm216_vm8, %v219_v56, %v221_v60 }
  0xba   : > { %v230_v0 = vsel %vm216_vm8, %v227_v54, %v229_v62  ;;  %v1445_v1 = vmul.u32.u64.low %v1388_v37, %v226_v61  ;;  %v1446_v2 = vmul.u32.u64.high %v1388_v37, %v226_v61, %v1445_v1  ;;  %v502_v7 = vand.u32 8388607, %v495_v38 }
  0xbb   : > { %v1449_v3 = vmul.u32.u64.low %v1388_v37, %v230_v0  ;;  %v1450_v4 = vmul.u32.u64.high %v1388_v37, %v230_v0, %v1449_v3  ;;  %v453_v5 = vshrl.u32 %v452_v63, 30  ;;  %v507_v11 = vsel %vm506_vm11, %v1392_v43, 0 }
  0xbc   : > { %v241_v14 = vadd.s32 1, %v1446_v2  ;;  %v290_v15 = vand.u32 2139095040, %v1382_v34  ;;  %v238_v17 = vmul.u32 %v1388_v37, %v222_v6  ;;  %v509_v36 = vand.u32 31, %v507_v11 }
  0xbd   : > { %v454_v13 = vshll.u32 %v453_v5, 30  ;;  %vm240_vm12 = vc.u32 %v1450_v4, %v1445_v1  ;;  %v477_v19 = vsub.s32 4, %v453_v5  ;;  %v180_v21 = vlaneseq }
  0xbe   : > { %v242_v20 = vsel %vm240_vm12, %v241_v14, %v1446_v2  ;;  %v503_v25 = vor.u32 8388608, %v502_v7  ;;  %v291_v27 = vshrl.u32 %v290_v15, 23  ;;  %v287_v28 = vand.u32 2147483647, %v1382_v34 }
  0xbf   : > { %v455_v18 = vsub.s32 %v451_v55, %v454_v13  ;;  %v243_v22 = vadd.s32 %v242_v20, %v238_v17  ;;  %v478_v37 = vsel %vm393_vm13, %v477_v19, %v453_v5  ;;  %v510_v30 = vsub.s32 32, %v509_v36 }
  0xc0   : > { %v1466_v31 = vand.u32 127, %v180_v21  ;;  %v1476_v39 = vshll.u32 %v503_v25, 8  ;;  %v447_v41 = vadd.s32 %v1419_v24, %v1416_v23  ;;  %v1480_v47 = vshrl.u32 %v507_v11, 5 }
  0xc1   : > { %v457_v26 = vsub.s32 0, %v455_v18  ;;  %v244_v43 = vadd.s32 536870912, %v243_v22  ;;  %v1482_v49 = vadd.s32 4294967169, %v291_v27  ;;  %v1486_v51 = vsel %vm1470_vm14, 0, %v478_v37 }
  0xc2   : > { %v1489_v10 = vadd.s32 %v1445_v1, %v1450_v4  ;;  %v1494_v35 = vand.u32 8388607, %v287_v28  ;;  %v512_v23 = vshll.u32 %v1288_v40, %v509_v36  ;;  %v513_v24 = vshrl.u32 %v1289_v44, %v510_v30 }
  0xc3   : > { %v1112_v29 = vmin.u32 %v457_v26, %v455_v18  ;;  %v1474_v33 = vshrl.u32 %v244_v43, 30  ;;  %v515_v42 = vshll.u32 %v1289_v44, %v509_v36  ;;  %v516_v55 = vshrl.u32 %v1290_v46, %v510_v30 }
  0xc4   : > { %v519_v56 = vshrl.u32 %v1291_v48, %v510_v30  ;;  %v522_v58 = vshrl.u32 %v1292_v50, %v510_v30  ;;  %v1505_v59 = vadd.s32 3, %v1486_v51  ;;  %v511_v60 = vshrl.u32 %v1288_v40, %v510_v30 }
  0xc5   : > { %v459_v45 = vclz %v1112_v29  ;;  %v246_v52 = vshll.u32 %v1474_v33, 30  ;;  %v525_v61 = vshrl.u32 %v1293_v57, %v510_v30  ;;  %v518_v0 = vshll.u32 %v1290_v46, %v509_v36 }
  0xc6   : > { %v521_v1 = vshll.u32 %v1291_v48, %v509_v36  ;;  %v514_v4 = vor.u32 %v513_v24, %v512_v23  ;;  %v524_v5 = vshll.u32 %v1292_v50, %v509_v36  ;;  %v517_v7 = vor.u32 %v516_v55, %v515_v42 }
  0xc7   : > { %v1113_v53 = vadd.s32 4294967294, %v459_v45  ;;  %v1499_v54 = vsub.s32 %v243_v22, %v246_v52  ;;  %v520_v11 = vor.u32 %v519_v56, %v518_v0  ;;  %v269_v21 = vsub.s32 4, %v1474_v33 }
  0xc8   : > { %v523_v13 = vor.u32 %v522_v58, %v521_v1  ;;  %v526_v19 = vor.u32 %v525_v61, %v524_v5  ;;  %vm527_vm1 = vcmp.lt.s32.totalorder %v1480_v47, 1  ;;  %vm528_vm2 = vcmp.lt.s32.totalorder %v1480_v47, 2 }
  0xc9   : > { %vm1114_vm15 = vcmp.lt.s32.totalorder %v1113_v53, 0  ;;  %v249_v63 = vsub.s32 0, %v1499_v54  ;;  %vm529_vm3 = vcmp.lt.s32.totalorder %v1480_v47, 3  ;;  %vm530_vm4 = vcmp.lt.s32.totalorder %v1480_v47, 4 }
  0xca   : > { %v462_v62 = vsel %vm1114_vm15, 0, %v1113_v53  ;;  %v536_v26 = vsel %vm530_vm4, %v523_v13, 920167782  ;;  %v539_v27 = vsel %vm527_vm1, %v517_v7, %v520_v11  ;;  %vm1526_vm5 = vcmp.le.f32.partialorder %v183_v12, 0.7853982 }
  0xcb   : > { %v463_v2 = vsub.s32 32, %v462_v62  ;;  %v467_v3 = vsub.s32 4294967266, %v462_v62  ;;  %v1104_v6 = vmin.u32 %v249_v63, %v1499_v54  ;;  %v464_v14 = vshll.u32 %v455_v18, %v462_v62 }
  0xcc   : > { %v535_v18 = vsel %vm527_vm1, %v514_v4, %v517_v7  ;;  %v532_v37 = vsel %vm530_vm4, %v520_v11, 2102212464  ;;  %v537_v30 = vsel %vm529_vm3, %v520_v11, %v536_v26  ;;  %v531_v52 = vsel %vm527_vm1, %v511_v60, %v514_v4 }
  0xcd   : > { %v465_v15 = vshrl.u32 %v447_v41, %v463_v2  ;;  %v468_v17 = vadd.s32 127, %v467_v3  ;;  %v251_v20 = vclz %v1104_v6  ;;  %v540_v41 = vsel %vm530_vm4, %v526_v19, 1326507024 }
  0xce   : > { %v541_v53 = vsel %vm529_vm3, %v523_v13, %v540_v41  ;;  %v538_v12 = vsel %vm528_vm2, %v535_v18, %v537_v30  ;;  %v533_v58 = vsel %vm529_vm3, %v517_v7, %v532_v37  ;;  %v297_v61 = vadd.s32 1, %v1482_v49 }
  0xcf   : > { %v466_v22 = vor.u32 %v465_v15, %v464_v14  ;;  %v469_v36 = vshll.u32 %v468_v17, 23  ;;  %v1105_v25 = vadd.s32 4294967294, %v251_v20  ;;  %v542_v42 = vsel %vm528_vm2, %v539_v27, %v541_v53 }
  0xd0   : > { %v1545_v63 = vmul.u32.u64.low %v1476_v39, %v542_v42  ;;  %v1546_v0 = vmul.u32.u64.high %v1476_v39, %v542_v42, %v1545_v63  ;;  %v1550_v3 = vmul.u32.u64.low %v1476_v39, %v538_v12  ;;  %v1551_v4 = vmul.u32.u64.high %v1476_v39, %v538_v12, %v1550_v3 }
  0xd1   : > { %v470_v43 = vor.u32 4788187, %v469_v36  ;;  %v473_v45 = vcvt.s32.f32 %v466_v22  ;;  %vm1106_vm6 = vcmp.lt.s32.totalorder %v1105_v25, 0  ;;  %v1555_v6 = vand.u32 3, %v1486_v51 }
  0xd2   : > { %v254_v24 = vsel %vm1106_vm6, 0, %v1105_v25  ;;  %v270_v49 = vsel %vm185_vm0, %v269_v21, %v1474_v33  ;;  %vm298_vm7 = vcmp.gt.s32.totalorder %v297_v61, 0  ;;  %v1565_v14 = vand.u32 3, %v1505_v59 }
  0xd3   : > { %v471_v23 = vand.u32 2147483647, %v470_v43  ;;  %v255_v55 = vsub.s32 32, %v254_v24  ;;  %v259_v56 = vsub.s32 4294967266, %v254_v24  ;;  %v256_v60 = vshll.u32 %v1499_v54, %v254_v24 }
  0xd4   : > { %v299_v11 = vsel %vm298_vm7, %v297_v61, 0  ;;  %vm552_vm8 = vc.u32 %v1546_v0, %v1550_v3  ;;  %v272_v47 = vsel %vm1526_vm5, 0, %v270_v49  ;;  %v553_v17 = vadd.s32 1, %v1551_v4 }
  0xd5   : > { %v474_v62 = vmul.f32 %v473_v45, %v471_v23  ;;  %v257_v1 = vshrl.u32 %v1489_v10, %v255_v55  ;;  %v260_v2 = vadd.s32 127, %v259_v56  ;;  %v534_v10 = vsel %vm528_vm2, %v531_v52, %v533_v58 }
  0xd6   : > { %v1569_v51 = vshrl.u32 %v299_v11, 5  ;;  %v550_v59 = vmul.u32 %v1476_v39, %v534_v10  ;;  %v301_v20 = vand.u32 31, %v299_v11  ;;  %v554_v22 = vsel %vm552_vm8, %v553_v17, %v1551_v4 }
  0xd7   : > { %v475_v5 = vxor.u32 2147483648, %v474_v62  ;;  %v258_v54 = vor.u32 %v257_v1, %v256_v60  ;;  %v261_v7 = vshll.u32 %v260_v2, 23  ;;  %vm490_vm11 = vcmp.eq.s32.totalorder %v1565_v14, 2 }
  0xd8   : > { %vm319_vm9 = vcmp.lt.s32.totalorder %v1569_v51, 1  ;;  %v555_v36 = vadd.s32 %v554_v22, %v550_v59  ;;  %v302_v32 = vsub.s32 32, %v301_v20  ;;  %v304_v25 = vshll.u32 %v1288_v40, %v301_v20 }
  0xd9   : > { %v476_v13 = vsel %vm393_vm13, %v475_v5, %v474_v62  ;;  %v262_v15 = vor.u32 4788187, %v261_v7  ;;  %v265_v19 = vcvt.s32.f32 %v258_v54  ;;  %vm321_vm10 = vcmp.lt.s32.totalorder %v1569_v51, 3 }
  0xda   : > { %v479_v33 = vsel %vm1470_vm14, %v1367_v8, %v476_v13  ;;  %v307_v26 = vshll.u32 %v1289_v44, %v301_v20  ;;  %v310_v27 = vshll.u32 %v1290_v46, %v301_v20  ;;  %v313_v39 = vshll.u32 %v1291_v48, %v301_v20 }
  0xdb   : > { %1207 = vcosq.f32 %v479_v33  ;;  %v263_v21 = vand.u32 2147483647, %v262_v15  ;;  %vm903_vm12 = vcmp.eq.s32.totalorder %v1555_v6, 2  ;;  %v556_v43 = vadd.s32 536870912, %v555_v36 }
  0xdc   : > { %1209 = vsinq.f32 %v479_v33  ;;  %v305_v37 = vshrl.u32 %v1289_v44, %v302_v32  ;;  %v308_v30 = vshrl.u32 %v1290_v46, %v302_v32  ;;  %v1590_v41 = vshll.u32 %v1292_v50, %v301_v20 }
  0xdd   : > { %v266_v18 = vmul.f32 %v265_v19, %v263_v21  ;;  %vm487_vm13 = vcmp.eq.s32.totalorder %v1565_v14, 0  ;;  %vm900_vm14 = vcmp.eq.s32.totalorder %v1555_v6, 0  ;;  %v311_v52 = vshrl.u32 %v1291_v48, %v302_v32 }
  0xde   : > { %v314_v53 = vshrl.u32 %v1292_v50, %v302_v32  ;;  %v317_v23 = vshrl.u32 %v1293_v57, %v302_v32  ;;  %vm182_vm15 = vcmp.lt.s32.totalorder %v1466_v31, 64  ;;  %vm899_vm1 = vcmp.lt.s32.totalorder %v1555_v6, 2 }
  0xdf   : > { %v267_v45 = vxor.u32 2147483648, %v266_v18  ;;  %v1599_v44 = vshrl.u32 %v556_v43, 30  ;;  %v303_v46 = vshrl.u32 %v1288_v40, %v302_v32  ;;  %v306_v24 = vor.u32 %v305_v37, %v304_v25 }
  0xe0   : > { %v309_v12 = vor.u32 %v308_v30, %v307_v26  ;;  %v312_v55 = vor.u32 %v311_v52, %v310_v27  ;;  %v315_v48 = vor.u32 %v314_v53, %v313_v39  ;;  %v318_v50 = vor.u32 %v317_v23, %v1590_v41 }
  0xe1   : > { %v268_v42 = vsel %vm185_vm0, %v267_v45, %v266_v18  ;;  %v558_v56 = vshll.u32 %v1599_v44, 30  ;;  %vm322_vm2 = vcmp.lt.s32.totalorder %v1569_v51, 4  ;;  %v323_v40 = vsel %vm319_vm9, %v303_v46, %v306_v24 }
  0xe2   : > { %v271_v57 = vsel %vm1526_vm5, %v1369_v9, %v268_v42  ;;  %v324_v58 = vsel %vm322_vm2, %v312_v55, 2102212464  ;;  %v327_v61 = vsel %vm319_vm9, %v306_v24, %v309_v12  ;;  %v328_v29 = vsel %vm322_vm2, %v315_v48, 920167782 }
  0xe3   : > { %1211 = vcosq.f32 %v271_v57  ;;  %v1619_v60 = vsub.s32 %v555_v36, %v558_v56  ;;  %vm320_vm0 = vcmp.lt.s32.totalorder %v1569_v51, 2  ;;  %v325_v63 = vsel %vm321_vm10, %v309_v12, %v324_v58 }
  0xe4   : > { %1213 = vsinq.f32 %v271_v57  ;;  %v276_v4 = vadd.s32 3, %v272_v47  ;;  %v1626_v5 = vsel %vm320_vm0, %v323_v40, %v325_v63  ;;  %v329_v49 = vsel %vm321_vm10, %v312_v55, %v328_v29 }
  0xe5   : > { %v1208_v62 = vpop.eup %1207  ;;  %v692_v7 = vand.u32 3, %v272_v47  ;;  %v561_v10 = vsub.s32 0, %v1619_v60  ;;  %v295_v11 = vor.u32 8388608, %v1494_v35  ;;  %v330_v15 = vsel %vm320_vm0, %v327_v61, %v329_v49 }
  0xe6   : > { %v1210_v1 = vpop.eup %1209  ;;  %v491_v2 = vxor.u32 2147483648, %v1208_v62  ;;  %v331_v17 = vsel %vm319_vm9, %v309_v12, %v312_v55  ;;  %vm486_vm3 = vcmp.lt.s32.totalorder %v1565_v14, 2  ;;  %vm483_vm4 = vweird.f32 %v1367_v8 }
  0xe7   : > { %v488_v54 = vxor.u32 2147483648, %v1210_v1  ;;  %v1116_v19 = vmin.u32 %v561_v10, %v1619_v60  ;;  %v277_v21 = vand.u32 3, %v276_v4  ;;  %v335_v25 = vshll.u32 %v295_v11, 8 }
  0xe8   : > { %v492_v13 = vsel %vm490_vm11, %v491_v2, %v1210_v1  ;;  %v905_v33 = vsel %vm903_vm12, %v491_v2, %v1210_v1  ;;  %vm275_vm5 = vweird.f32 %v1369_v9  ;;  %vm693_vm6 = vcmp.lt.s32.totalorder %v692_v7, 2 }
  0xe9   : > { %v489_v47 = vsel %vm487_vm13, %v1208_v62, %v488_v54  ;;  %v902_v35 = vsel %vm900_vm14, %v1208_v62, %v488_v54  ;;  %v563_v32 = vclz %v1116_v19  ;;  %vm694_vm7 = vcmp.eq.s32.totalorder %v692_v7, 0 }
  0xea   : > { %v493_v59 = vsel %vm486_vm3, %v489_v47, %v492_v13  ;;  %v906_v20 = vsel %vm899_vm1, %v902_v35, %v905_v33  ;;  %v332_v6 = vsel %vm322_vm2, %v318_v50, 1326507024  ;;  %vm278_vm8 = vcmp.lt.s32.totalorder %v277_v21, 2 }
  0xeb   : > { %v494_v22 = vsel %vm483_vm4, nan, %v493_v59  ;;  %v907_v36 = vsel %vm483_vm4, nan, %v906_v20  ;;  %v1117_v8 = vadd.s32 4294967294, %v563_v32  ;;  %vm279_vm9 = vcmp.eq.s32.totalorder %v277_v21, 0 }
  0xec   : > { %v1013_v14 = vsel %vm182_vm15, %v494_v22, %v907_v36  ;;  %v1659_v18 = vmul.u32.u64.low %v335_v25, %v330_v15  ;;  %v1660_v26 = vmul.u32.u64.high %v335_v25, %v330_v15, %v1659_v18  ;;  %vm697_vm11 = vcmp.eq.s32.totalorder %v692_v7, 2 }
  0xed   : > { %1017 = vst [vmem:[%s1654_s30 + $0x10] sm:$0xff] %v1013_v14  ;;  %v1212_v27 = vpop.eup %1211  ;;  %v333_v39 = vsel %vm321_vm10, %v315_v48, %v332_v6  ;;  %vm282_vm12 = vcmp.eq.s32.totalorder %v277_v21, 2  ;;  %vm1118_vm13 = vcmp.lt.s32.totalorder %v1117_v8, 0  ;;  %v551_v24 = vadd.s32 %v1550_v3, %v1546_v0 }
  0xee   : > { %v1214_v43 = vpop.eup %1213  ;;  %v283_v37 = vxor.u32 2147483648, %v1212_v27  ;;  %v334_v30 = vsel %vm320_vm0, %v331_v17, %v333_v39  ;;  %v566_v45 = vsel %vm1118_vm13, 0, %v1117_v8  ;;  %v345_v51 = vadd.s32 1, %v1660_v26 }
  0xef   : > { %v280_v41 = vxor.u32 2147483648, %v1214_v43  ;;  %v1666_v52 = vmul.u32.u64.low %v335_v25, %v334_v30  ;;  %v1667_v53 = vmul.u32.u64.high %v335_v25, %v334_v30, %v1666_v52  ;;  %v567_v12 = vsub.s32 32, %v566_v45 }
  0xf0   : > { %v284_v23 = vsel %vm282_vm12, %v283_v37, %v1214_v43  ;;  %v699_v46 = vsel %vm697_vm11, %v283_v37, %v1214_v43  ;;  %v571_v48 = vsub.s32 4294967266, %v566_v45  ;;  %v568_v56 = vshll.u32 %v1619_v60, %v566_v45 }
  0xf1   : > { %v281_v42 = vsel %vm279_vm9, %v1212_v27, %v280_v41  ;;  %v696_v55 = vsel %vm694_vm7, %v1212_v27, %v280_v41  ;;  %v569_v40 = vshrl.u32 %v551_v24, %v567_v12  ;;  %v343_v61 = vadd.s32 %v1659_v18, %v1667_v53 }
  0xf2   : > { %v285_v50 = vsel %vm278_vm8, %v281_v42, %v284_v23  ;;  %v700_v57 = vsel %vm693_vm6, %v696_v55, %v699_v46  ;;  %v572_v3 = vadd.s32 127, %v571_v48  ;;  %v342_v62 = vmul.u32 %v335_v25, %v1626_v5 }
  0xf3   : > { %v286_v58 = vsel %vm275_vm5, nan, %v285_v50  ;;  %v701_v0 = vsel %vm275_vm5, nan, %v700_v57  ;;  %vm344_vm10 = vc.u32 %v1667_v53, %v1659_v18  ;;  %v570_v63 = vor.u32 %v569_v40, %v568_v56 }
  0xf4   : > { %v1011_v29 = vsel %vm182_vm15, %v286_v58, %v701_v0  ;;  %v573_v60 = vshll.u32 %v572_v3, 23  ;;  %v346_v1 = vsel %vm344_vm10, %v345_v51, %v1660_v26  ;;  %v581_v11 = vsub.s32 4, %v1599_v44 }
  0xf5   : > { %1015 = vst [vmem:[%s1654_s30] sm:$0xff] %v1011_v29  ;;  %v347_v2 = vadd.s32 %v346_v1, %v342_v62  ;;  %v577_v54 = vcvt.s32.f32 %v570_v63  ;;  %vm497_vm14 = vcmp.lt.s32.totalorder %v1375_v16, 0  ;;  %vm496_vm1 = vcmp.le.f32.partialorder %v495_v38, 0.7853982 }
  0xf6   : > { %v574_v4 = vor.u32 4788187, %v573_v60  ;;  %v582_v17 = vsel %vm497_vm14, %v581_v11, %v1599_v44  ;;  %vm587_vm8 = vweird.f32 %v1375_v16  ;;  %vm289_vm9 = vcmp.lt.s32.totalorder %v1382_v34, 0 }
  0xf7   : > { %v348_v49 = vadd.s32 536870912, %v347_v2  ;;  %v584_v19 = vsel %vm496_vm1, 0, %v582_v17  ;;  %vm288_vm11 = vcmp.le.f32.partialorder %v287_v28, 0.7853982 }
  0xf8   : > { %v575_v9 = vand.u32 2147483647, %v574_v4  ;;  %v588_v21 = vadd.s32 3, %v584_v19  ;;  %v1001_v36 = vand.u32 3, %v584_v19 }
  0xf9   : > { %v349_v7 = vshrl.u32 %v348_v49, 30 }
  0xfa   : > { %v578_v10 = vmul.f32 %v577_v54, %v575_v9  ;;  %v589_v32 = vand.u32 3, %v588_v21  ;;  %vm1003_vm0 = vcmp.eq.s32.totalorder %v1001_v36, 0  ;;  %vm1006_vm5 = vcmp.eq.s32.totalorder %v1001_v36, 2 }
  0xfb   : > { %v350_v13 = vshll.u32 %v349_v7, 30  ;;  %vm1002_vm7 = vcmp.lt.s32.totalorder %v1001_v36, 2  ;;  %v373_v50 = vsub.s32 4, %v349_v7 }
  0xfc   : > { %v579_v33 = vxor.u32 2147483648, %v578_v10  ;;  %vm591_vm3 = vcmp.eq.s32.totalorder %v589_v32, 0  ;;  %vm594_vm4 = vcmp.eq.s32.totalorder %v589_v32, 2  ;;  %vm590_vm6 = vcmp.lt.s32.totalorder %v589_v32, 2 }
  0xfd   : > { %v351_v5 = vsub.s32 %v347_v2, %v350_v13  ;;  %v374_v56 = vsel %vm289_vm9, %v373_v50, %v349_v7 }
  0xfe   : > { %v580_v15 = vsel %vm497_vm14, %v579_v33, %v578_v10  ;;  %v376_v58 = vsel %vm288_vm11, 0, %v374_v56 }
  0xff   : > { %v583_v47 = vsel %vm496_vm1, %v1375_v16, %v580_v15  ;;  %v353_v35 = vsub.s32 0, %v351_v5  ;;  %v380_v0 = vadd.s32 3, %v376_v58 }
 0x100   : > { %1215 = vcosq.f32 %v583_v47 }
 0x101   : > { %1217 = vsinq.f32 %v583_v47  ;;  %v1108_v59 = vmin.u32 %v353_v35, %v351_v5  ;;  %v381_v3 = vand.u32 3, %v380_v0 }
 0x103   : > { %v355_v20 = vclz %v1108_v59  ;;  %vm386_vm12 = vcmp.eq.s32.totalorder %v381_v3, 2  ;;  %vm383_vm10 = vcmp.eq.s32.totalorder %v381_v3, 0  ;;  %vm382_vm1 = vcmp.lt.s32.totalorder %v381_v3, 2 }
 0x105   : > { %v1109_v22 = vadd.s32 4294967294, %v355_v20 }
 0x107   : > { %vm1110_vm2 = vcmp.lt.s32.totalorder %v1109_v22, 0 }
 0x108   : > { %v358_v25 = vsel %vm1110_vm2, 0, %v1109_v22 }
 0x109   : > { %v359_v14 = vsub.s32 32, %v358_v25  ;;  %v363_v8 = vsub.s32 4294967266, %v358_v25  ;;  %v360_v18 = vshll.u32 %v351_v5, %v358_v25 }
 0x10a   : > { %v1216_v38 = vpop.eup %1215 }
 0x10b   : > { %v1218_v6 = vpop.eup %1217  ;;  %v595_v44 = vxor.u32 2147483648, %v1216_v38  ;;  %v361_v26 = vshrl.u32 %v343_v61, %v359_v14  ;;  %v364_v27 = vadd.s32 127, %v363_v8  ;;  %v795_v61 = vand.u32 3, %v376_v58 }
 0x10c   : > { %v592_v39 = vxor.u32 2147483648, %v1218_v6 }
 0x10d   : > { %v596_v43 = vsel %vm594_vm4, %v595_v44, %v1218_v6  ;;  %v1008_v37 = vsel %vm1006_vm5, %v595_v44, %v1218_v6  ;;  %v362_v30 = vor.u32 %v361_v26, %v360_v18  ;;  %v365_v41 = vshll.u32 %v364_v27, 23 }
 0x10e   : > { %v593_v45 = vsel %vm591_vm3, %v1216_v38, %v592_v39  ;;  %v1005_v52 = vsel %vm1003_vm0, %v1216_v38, %v592_v39  ;;  %vm800_vm13 = vcmp.eq.s32.totalorder %v795_v61, 2  ;;  %vm797_vm14 = vcmp.eq.s32.totalorder %v795_v61, 0 }
 0x10f   : > { %v597_v53 = vsel %vm590_vm6, %v593_v45, %v596_v43  ;;  %v1009_v23 = vsel %vm1002_vm7, %v1005_v52, %v1008_v37  ;;  %v366_v46 = vor.u32 4788187, %v365_v41  ;;  %v369_v48 = vcvt.s32.f32 %v362_v30 }
 0x110   : > { %v598_v24 = vsel %vm587_vm8, nan, %v597_v53  ;;  %v1010_v12 = vsel %vm587_vm8, nan, %v1009_v23  ;;  %vm796_vm2 = vcmp.lt.s32.totalorder %v795_v61, 2  ;;  %vm379_vm0 = vweird.f32 %v1382_v34 }
 0x111   : > { %v1014_v42 = vsel %vm182_vm15, %v598_v24, %v1010_v12  ;;  %v367_v55 = vand.u32 2147483647, %v366_v46 }
 0x112   : > { %1018 = vst [vmem:[%s1654_s30 + $0x18] sm:$0xff] %v1014_v42 }
 0x113   : > { %v370_v51 = vmul.f32 %v369_v48, %v367_v55 }
 0x115   : > { %v371_v57 = vxor.u32 2147483648, %v370_v51 }
 0x117   : > { %v372_v16 = vsel %vm289_vm9, %v371_v57, %v370_v51 }
 0x118   : > { %v375_v40 = vsel %vm288_vm11, %v1382_v34, %v372_v16 }
 0x119   : > { %1219 = vcosq.f32 %v375_v40 }
 0x11a   : > { %1221 = vsinq.f32 %v375_v40 }
 0x123   : > { %v1220_v29 = vpop.eup %1219 }
 0x124   : > { %v1222_v62 = vpop.eup %1221  ;;  %v387_v63 = vxor.u32 2147483648, %v1220_v29 }
 0x125   : > { %v384_v60 = vxor.u32 2147483648, %v1222_v62 }
 0x126   : > { %v388_v28 = vsel %vm386_vm12, %v387_v63, %v1222_v62  ;;  %v802_v1 = vsel %vm800_vm13, %v387_v63, %v1222_v62 }
 0x127   : > { %v385_v2 = vsel %vm383_vm10, %v1220_v29, %v384_v60  ;;  %v799_v4 = vsel %vm797_vm14, %v1220_v29, %v384_v60 }
 0x128   : > { %v389_v49 = vsel %vm382_vm1, %v385_v2, %v388_v28  ;;  %v803_v9 = vsel %vm796_vm2, %v799_v4, %v802_v1 }
 0x129   : > { %v390_v54 = vsel %vm379_vm0, nan, %v389_v49  ;;  %v804_v7 = vsel %vm379_vm0, nan, %v803_v9 }
 0x12a   : > { %v1012_v10 = vsel %vm182_vm15, %v390_v54, %v804_v7 }
 0x12b   : > { %1016 = vst [vmem:[%s1654_s30 + $0x8] sm:$0xff] %v1012_v10 }
 0x12c   : > { %1236 = shalt.err (!%p1233_p3)
}
 0x12d   : > { %s1237_s21 = scalar_lea.hbm %s1709_s7, 512  ;;  %s1241_s24 = scalar_lea.hbm %s1761_s2, 1024 }
 0x12e   : > { %p1238_p4 = scmp.ne.s32.totalorder %s1709_s7, %s1237_s21  ;;  %p1242_p9 = scmp.lt.u32.totalorder %s1709_s7, %s1761_s2 }
 0x12f   : > { %p1243_p10 = scmp.lt.u32.totalorder %s1241_s24, %s1237_s21  ;;  %p1245_p12 = scmp.lt.u32.totalorder %s1237_s21, %s1709_s7 }
 0x130   : > { %p1239_p7 = pnand %p1238_p4, %p1350_p5 }
 0x131   : > { %p1244_p11 = por %p1243_p10, %p1242_p9 }
 0x132   : > { %p1240_p8 = pneg %p1239_p7 }
 0x133   : > { %p1246_p13 = por %p1245_p12, %p1244_p11 }
 0x135   : > { %p1247_p0 = pnand %p1246_p13, %p1240_p8 }
 0x137   : > { %1250 = shalt.err (!%p1247_p0)
}
 0x138   : > { %s1295_s27 = smov 128   ;;  %s1296_s28 = smov 8  }
 0x139   : > { %1157 = dma.vmem_to_hbm [thread:$0]  (%p1350_p5), %s1711_s4, 512, %s1709_s7, %s1718_s8, %s1295_s27, %s1295_s27, %s1296_s28  }
 0x13a PF: > { %p1163_p1 = scmp.ge.s32.totalorder %s1285_s12, 2  ;;  %s1048_s29 = sand.u32 1, %s1273_s9  }
 0x13b   : > { %s1049_s30 = scalar_lea.sflag [#allocation3], %s1048_s29 }
 0x13c   : > { %p1160_p2 = pnand %p1163_p1, %p1354_p6 }
 0x13e   : > { %1268 = dma.done.wait (!%p1160_p2), %s1049_s30, 512  }
 0x13f   : > { %1270 = vsyncadd (!%p1160_p2), %s1049_s30, 4294966784  ;;  %p12_p3 = scmp.ge.s32.totalorder %s1337_s15, 4   ;;  %s1768_s9 = smov %s1277_s10 }
 0x140   : > { %s1769_s10 = smov %s1281_s11  ;;  %s1770_s11 = smov %s1348_s18 }
 0x141   : > { %s1771_s12 = smov %s1337_s15  ;;  %14 = sbr.rel (!%p12_p3) target bundleno = 3 (0x3), region = 63 }
 0x148   :  { %1054 = vsyncpa [#allocation3], 1 }
 0x149   :  { %1056 = vsyncpa [#allocation3 + $0x1], 1 }

</bundles_post_ra>
